<compile_context>
chip_gen: v5e
topology: v5e:2x2
jax: 0.10.0
libtpu: 0.0.40
codegen_flags: <defaults>
</compile_context>

<pallas_src>
import math
from functools import partial

import jax
import jax.numpy as jnp
from jax.experimental import pallas as pl
from jax.experimental.pallas import tpu as pltpu


def _gelu_exact(x):
    # torch.nn.GELU default: 0.5 * x * (1 + erf(x / sqrt(2)))
    return 0.5 * x * (1.0 + jax.lax.erf(x * 0.7071067811865476))


def _layernorm(x, gamma, beta, eps=1e-6):
    mu = jnp.mean(x, axis=-1, keepdims=True)
    var = jnp.mean((x - mu) ** 2, axis=-1, keepdims=True)
    return (x - mu) * jax.lax.rsqrt(var + eps) * gamma + beta


def block_kernel(xf_ref, xq_ref,
                 g1_ref, b1_ref,
                 wq_ref, bq_ref, wk_ref, bk_ref, wv_ref, bv_ref,
                 wp_ref, bp_ref,
                 g2_ref, b2_ref,
                 w1_ref, c1_ref, w2_ref, c2_ref,
                 out_ref,
                 *, n_heads, head_dim, approx_recip):
    E = n_heads * head_dim
    S = xf_ref.shape[1]          # full sequence (K/V path)
    tq = xq_ref.shape[1]         # query tile rows handled by this grid step
    cdt = wq_ref.dtype           # MXU operand dtype (f32 or bf16)
    scale = head_dim ** -0.5

    g1 = g1_ref[...].astype(jnp.float32)
    b1 = b1_ref[...].astype(jnp.float32)

    # ---- LayerNorm1 (f32): full sequence for K/V, query tile for Q/residual ----
    xn_full = _layernorm(xf_ref[0].astype(jnp.float32), g1, b1)      # (S, E)
    x_q = xq_ref[0]                                                  # (tq, E)
    xn_q = _layernorm(x_q.astype(jnp.float32), g1, b1)               # (tq, E)

    def proj(a, w_ref, b_ref):
        # MXU operands in `cdt`, accumulation in f32, bias add in f32.
        return (jnp.dot(a.astype(cdt), w_ref[...],
                        preferred_element_type=jnp.float32)
                + b_ref[...].astype(jnp.float32))

    q = proj(xn_q, wq_ref, bq_ref) * scale        # fold 1/sqrt(hd) into Q
    k = proj(xn_full, wk_ref, bk_ref)
    v = proj(xn_full, wv_ref, bv_ref)

    def to_heads(t):
        # (seq, E) f32 -> (n_heads, seq, head_dim); only a 2-D transpose,
        # a major-dim split and a minor (0,2,1) transpose (all supported);
        # cast to MXU operand dtype last.
        seq = t.shape[0]
        return (t.T.reshape(n_heads, head_dim, seq)
                .transpose(0, 2, 1).astype(cdt))

    q3, k3, v3 = to_heads(q), to_heads(k), to_heads(v)               # (h,*,hd)

    # ---- head-batched attention: one batched contraction, no per-head loop ----
    s = jnp.einsum('hqd,hkd->hqk', q3, k3,
                   preferred_element_type=jnp.float32)               # (h,tq,S)
    s = s - jnp.max(s, axis=-1, keepdims=True)
    p = jnp.exp(s)
    p = p * pl.reciprocal(jnp.sum(p, axis=-1, keepdims=True),
                          approx=approx_recip)
    wa3 = jnp.einsum('hqk,hkd->hqd', p.astype(cdt), v3,
                     preferred_element_type=jnp.float32)             # (h,tq,hd)
    # concat heads along features (== transpose(1,2).flatten(2) in torch)
    wa = wa3.transpose(0, 2, 1).reshape(E, tq).T                     # (tq, E)

    x1 = x_q.astype(jnp.float32) + proj(wa, wp_ref, bp_ref)          # residual 1

    # ---- LayerNorm2 + MLP ----
    x2n = _layernorm(x1, g2_ref[...].astype(jnp.float32),
                     b2_ref[...].astype(jnp.float32))
    h1 = _gelu_exact(proj(x2n, w1_ref, c1_ref))
    out_ref[0] = (x1 + proj(h1, w2_ref, c2_ref)).astype(out_ref.dtype)
    # TODO(synk): for very long sequences, replace the full-S K/V path with an
    # online-softmax (flash-style) accumulation over a third grid axis so the
    # (n_heads, tq, S) score block is never materialized.


def transformer_block(x, params, *, n_heads, compute_dtype=None, tq=None):
    B, S, E = x.shape
    assert E % n_heads == 0
    head_dim = E // n_heads
    hidden = params["w1"].shape[1]
    f32 = jnp.float32
    cdt = jnp.dtype(compute_dtype) if compute_dtype is not None else x.dtype
    approx_recip = (cdt == jnp.bfloat16)   # approx reciprocal only on bf16 path

    if tq is None:
        tq = S if S <= 256 else 256
    assert S % tq == 0, "sequence length must be divisible by the query tile"
    nq = S // tq

    # Split fused QKV into per-projection weights (lane-aligned operands, no
    # in-kernel column slicing); cast matmul weights to the compute dtype,
    # keep biases / LN params in f32.
    wqkv, bqkv = params["wqkv"], params["bqkv"]
    wq = wqkv[:, :E].astype(cdt)
    wk = wqkv[:, E:2 * E].astype(cdt)
    wv = wqkv[:, 2 * E:].astype(cdt)
    bq = bqkv[:, :E].astype(f32)
    bk = bqkv[:, E:2 * E].astype(f32)
    bv = bqkv[:, 2 * E:].astype(f32)
    wproj = params["wproj"].astype(cdt)
    w1 = params["w1"].astype(cdt)
    w2 = params["w2"].astype(cdt)

    def rep(shape):
        # constant-index block: fetched once by the pipeline (invariant weights)
        return pl.BlockSpec(shape, lambda b, qi: (0,) * len(shape))

    in_specs = [
        pl.BlockSpec((1, S, E), lambda b, qi: (b, 0, 0)),    # x (full seq, K/V)
        pl.BlockSpec((1, tq, E), lambda b, qi: (b, qi, 0)),  # x (query tile)
        rep((1, E)), rep((1, E)),                            # LN1 gamma/beta
        rep((E, E)), rep((1, E)),                            # Wq, bq
        rep((E, E)), rep((1, E)),                            # Wk, bk
        rep((E, E)), rep((1, E)),                            # Wv, bv
        rep((E, E)), rep((1, E)),                            # Wproj, bproj
        rep((1, E)), rep((1, E)),                            # LN2 gamma/beta
        rep((E, hidden)), rep((1, hidden)),                  # fc1
        rep((hidden, E)), rep((1, E)),                       # fc2
    ]
    out_spec = pl.BlockSpec((1, tq, E), lambda b, qi: (b, qi, 0))

    # VMEM budget + advisory cost estimate.
    itemsize = jnp.dtype(cdt).itemsize
    weight_bytes = (4 * E * E + 2 * E * hidden) * itemsize
    act_bytes = 4 * (2 * S * E + 4 * tq * E + n_heads * tq * S + tq * hidden)
    vmem_limit = int(min(max(2 * weight_bytes + 4 * act_bytes + (8 << 20),
                             32 << 20), 100 << 20))

    steps = B * nq
    flops_per_step = (4 * S * E * E          # K, V projections
                      + 2 * tq * E * E       # Q projection
                      + 4 * tq * S * E       # scores + attn @ V
                      + 2 * tq * E * E       # output projection
                      + 4 * tq * E * hidden)  # MLP
    cost = pl.CostEstimate(
        flops=int(steps * flops_per_step),
        transcendentals=int(steps * (n_heads * tq * S + tq * hidden)),
        bytes_accessed=int(x.nbytes * (1 + nq) + x.nbytes + weight_bytes
                           + (6 * E + 2 * hidden) * 4),
    )

    kern = partial(block_kernel, n_heads=n_heads, head_dim=head_dim,
                   approx_recip=approx_recip)
    return pl.pallas_call(
        kern,
        out_shape=jax.ShapeDtypeStruct((B, S, E), x.dtype),
        grid_spec=pltpu.PrefetchScalarGridSpec(
            num_scalar_prefetch=0,
            grid=(B, nq),
            in_specs=in_specs,
            out_specs=out_spec,
        ),
        compiler_params=pltpu.CompilerParams(
            dimension_semantics=("parallel", "parallel"),
            vmem_limit_bytes=vmem_limit),
        cost_estimate=cost,
    )(x, x,
      params["g1"].astype(f32), params["b1"].astype(f32),
      wq, bq, wk, bk, wv, bv,
      wproj, params["bproj"].astype(f32),
      params["g2"].astype(f32), params["b2"].astype(f32),
      w1, params["bb1"].astype(f32),
      w2, params["bb2"].astype(f32))


def reference_block(x, p, *, n_heads):
    B, S, E = x.shape
    hd = E // n_heads

    def ln(v, g, b):
        mu = jnp.mean(v, -1, keepdims=True)
        var = jnp.mean((v - mu) ** 2, -1, keepdims=True)
        return (v - mu) / jnp.sqrt(var + 1e-6) * g + b

    xn = ln(x, p["g1"], p["b1"])
    qkv = xn @ p["wqkv"] + p["bqkv"]
    qkv = qkv.reshape(B, S, 3, n_heads, hd).transpose(2, 0, 3, 1, 4)
    q, k, v = qkv[0], qkv[1], qkv[2]
    dp = jnp.einsum("bhqd,bhkd->bhqk", q, k) * hd ** (-0.5)
    attn = jax.nn.softmax(dp, axis=-1)
    wa = jnp.einsum("bhqk,bhkd->bhqd", attn, v).transpose(0, 2, 1, 3).reshape(B, S, E)
    x1 = x + wa @ p["wproj"] + p["bproj"]
    x2n = ln(x1, p["g2"], p["b2"])
    h = jax.nn.gelu(x2n @ p["w1"] + p["bb1"], approximate=False)
    return x1 + h @ p["w2"] + p["bb2"]


if __name__ == "__main__":
    B, S, E = 2, 8, 32
    n_heads = 4
    mlp_ratio = 4
    hidden = E * mlp_ratio

    key = jax.random.PRNGKey(0)
    ks = jax.random.split(key, 9)

    params = {
        "g1": jnp.ones((1, E), jnp.float32),
        "b1": jnp.zeros((1, E), jnp.float32),
        "wqkv": jax.random.normal(ks[0], (E, 3 * E), jnp.float32) / math.sqrt(E),
        "bqkv": jax.random.normal(ks[1], (1, 3 * E), jnp.float32) * 0.02,
        "wproj": jax.random.normal(ks[2], (E, E), jnp.float32) / math.sqrt(E),
        "bproj": jax.random.normal(ks[3], (1, E), jnp.float32) * 0.02,
        "g2": jnp.ones((1, E), jnp.float32),
        "b2": jnp.zeros((1, E), jnp.float32),
        "w1": jax.random.normal(ks[4], (E, hidden), jnp.float32) / math.sqrt(E),
        "bb1": jax.random.normal(ks[5], (1, hidden), jnp.float32) * 0.02,
        "w2": jax.random.normal(ks[6], (hidden, E), jnp.float32) / math.sqrt(hidden),
        "bb2": jax.random.normal(ks[7], (1, E), jnp.float32) * 0.02,
    }
    x = jax.random.normal(ks[8], (B, S, E), jnp.float32)

    ref = reference_block(x, params, n_heads=n_heads)

    # f32 MXU operands: tight parity with the reference.
    out_f32 = jax.block_until_ready(transformer_block(x, params, n_heads=n_heads))
    assert out_f32.shape == (B, S, E)
    assert jnp.allclose(out_f32, ref, atol=1e-4, rtol=1e-4), "f32 kernel mismatch"

    # bf16 MXU operands with f32 accumulation (fast path on v6e/v7x): loose tol.
    out_bf16 = jax.block_until_ready(
        transformer_block(x, params, n_heads=n_heads, compute_dtype=jnp.bfloat16))
    assert jnp.allclose(out_bf16, ref, atol=1e-1, rtol=1e-1), "bf16 kernel drift too large"

    print("KERNEL_OK")
</pallas_src>

<mosaic_0001>
module attributes {stable_mosaic.version = 11 : i64} {
  func.func @block_kernel(%arg0: i32, %arg1: i32, %arg2: memref<1x8x32xf32, #tpu.memory_space<vmem>>, %arg3: memref<1x8x32xf32, #tpu.memory_space<vmem>>, %arg4: memref<1x32xf32, #tpu.memory_space<vmem>>, %arg5: memref<1x32xf32, #tpu.memory_space<vmem>>, %arg6: memref<32x32xf32, #tpu.memory_space<vmem>>, %arg7: memref<1x32xf32, #tpu.memory_space<vmem>>, %arg8: memref<32x32xf32, #tpu.memory_space<vmem>>, %arg9: memref<1x32xf32, #tpu.memory_space<vmem>>, %arg10: memref<32x32xf32, #tpu.memory_space<vmem>>, %arg11: memref<1x32xf32, #tpu.memory_space<vmem>>, %arg12: memref<32x32xf32, #tpu.memory_space<vmem>>, %arg13: memref<1x32xf32, #tpu.memory_space<vmem>>, %arg14: memref<1x32xf32, #tpu.memory_space<vmem>>, %arg15: memref<1x32xf32, #tpu.memory_space<vmem>>, %arg16: memref<32x128xf32, #tpu.memory_space<vmem>>, %arg17: memref<1x128xf32, #tpu.memory_space<vmem>>, %arg18: memref<128x32xf32, #tpu.memory_space<vmem>>, %arg19: memref<1x32xf32, #tpu.memory_space<vmem>>, %arg20: memref<1x8x32xf32, #tpu.memory_space<vmem>>) attributes {dimension_semantics = [#tpu.dimension_semantics<parallel>, #tpu.dimension_semantics<parallel>], iteration_bounds = array<i64: 2, 1>, scalar_prefetch = 0 : i64, scratch_operands = 0 : i64, tpu.core_type = #tpu.core_type<tc>, window_params = [{transform_indices = @transform_0, window_bounds = array<i64: 1, 8, 32>}, {transform_indices = @transform_1, window_bounds = array<i64: 1, 8, 32>}, {pipeline_mode = #tpu.pipeline_mode<synchronous>, transform_indices = @transform_2, window_bounds = array<i64: 1, 32>}, {pipeline_mode = #tpu.pipeline_mode<synchronous>, transform_indices = @transform_3, window_bounds = array<i64: 1, 32>}, {pipeline_mode = #tpu.pipeline_mode<synchronous>, transform_indices = @transform_4, window_bounds = array<i64: 32, 32>}, {pipeline_mode = #tpu.pipeline_mode<synchronous>, transform_indices = @transform_5, window_bounds = array<i64: 1, 32>}, {pipeline_mode = #tpu.pipeline_mode<synchronous>, transform_indices = @transform_6, window_bounds = array<i64: 32, 32>}, {pipeline_mode = #tpu.pipeline_mode<synchronous>, transform_indices = @transform_7, window_bounds = array<i64: 1, 32>}, {pipeline_mode = #tpu.pipeline_mode<synchronous>, transform_indices = @transform_8, window_bounds = array<i64: 32, 32>}, {pipeline_mode = #tpu.pipeline_mode<synchronous>, transform_indices = @transform_9, window_bounds = array<i64: 1, 32>}, {pipeline_mode = #tpu.pipeline_mode<synchronous>, transform_indices = @transform_10, window_bounds = array<i64: 32, 32>}, {pipeline_mode = #tpu.pipeline_mode<synchronous>, transform_indices = @transform_11, window_bounds = array<i64: 1, 32>}, {pipeline_mode = #tpu.pipeline_mode<synchronous>, transform_indices = @transform_12, window_bounds = array<i64: 1, 32>}, {pipeline_mode = #tpu.pipeline_mode<synchronous>, transform_indices = @transform_13, window_bounds = array<i64: 1, 32>}, {pipeline_mode = #tpu.pipeline_mode<synchronous>, transform_indices = @transform_14, window_bounds = array<i64: 32, 128>}, {pipeline_mode = #tpu.pipeline_mode<synchronous>, transform_indices = @transform_15, window_bounds = array<i64: 1, 128>}, {pipeline_mode = #tpu.pipeline_mode<synchronous>, transform_indices = @transform_16, window_bounds = array<i64: 128, 32>}, {pipeline_mode = #tpu.pipeline_mode<synchronous>, transform_indices = @transform_17, window_bounds = array<i64: 1, 32>}, {transform_indices = @transform_18, window_bounds = array<i64: 1, 8, 32>}]} {
    %c0 = arith.constant 0 : index
    %c0_0 = arith.constant 0 : index
    %0 = vector.load %arg4[%c0, %c0_0] : memref<1x32xf32, #tpu.memory_space<vmem>>, vector<1x32xf32>
    %c0_1 = arith.constant 0 : index
    %c0_2 = arith.constant 0 : index
    %1 = vector.load %arg5[%c0_1, %c0_2] : memref<1x32xf32, #tpu.memory_space<vmem>>, vector<1x32xf32>
    %c0_3 = arith.constant 0 : index
    %c0_4 = arith.constant 0 : index
    %c0_5 = arith.constant 0 : index
    %2 = vector.load %arg2[%c0_3, %c0_4, %c0_5] : memref<1x8x32xf32, #tpu.memory_space<vmem>>, vector<1x8x32xf32>
    %3 = vector.shape_cast %2 : vector<1x8x32xf32> to vector<8x32xf32>
    %cst = arith.constant dense<0.000000e+00> : vector<8xf32>
    %4 = vector.multi_reduction <add>, %3, %cst [1] : vector<8x32xf32> to vector<8xf32>
    %5 = vector.shape_cast %4 : vector<8xf32> to vector<8x1xf32>
    %cst_6 = arith.constant 3.200000e+01 : f32
    %6 = vector.broadcast %cst_6 : f32 to vector<8x1xf32>
    %7 = arith.divf %5, %6 : vector<8x1xf32>
    %8 = vector.broadcast %7 : vector<8x1xf32> to vector<8x32xf32>
    %9 = arith.subf %3, %8 : vector<8x32xf32>
    %10 = arith.mulf %9, %9 : vector<8x32xf32>
    %cst_7 = arith.constant dense<0.000000e+00> : vector<8xf32>
    %11 = vector.multi_reduction <add>, %10, %cst_7 [1] : vector<8x32xf32> to vector<8xf32>
    %12 = vector.shape_cast %11 : vector<8xf32> to vector<8x1xf32>
    %cst_8 = arith.constant 3.200000e+01 : f32
    %13 = vector.broadcast %cst_8 : f32 to vector<8x1xf32>
    %14 = arith.divf %12, %13 : vector<8x1xf32>
    %15 = vector.broadcast %7 : vector<8x1xf32> to vector<8x32xf32>
    %16 = arith.subf %3, %15 : vector<8x32xf32>
    %cst_9 = arith.constant 9.99999997E-7 : f32
    %17 = vector.broadcast %cst_9 : f32 to vector<8x1xf32>
    %18 = arith.addf %14, %17 : vector<8x1xf32>
    %19 = math.rsqrt %18 : vector<8x1xf32>
    %20 = vector.broadcast %19 : vector<8x1xf32> to vector<8x32xf32>
    %21 = arith.mulf %16, %20 : vector<8x32xf32>
    %22 = vector.broadcast %0 : vector<1x32xf32> to vector<8x32xf32>
    %23 = arith.mulf %21, %22 : vector<8x32xf32>
    %24 = vector.broadcast %1 : vector<1x32xf32> to vector<8x32xf32>
    %25 = arith.addf %23, %24 : vector<8x32xf32>
    %c0_10 = arith.constant 0 : index
    %c0_11 = arith.constant 0 : index
    %c0_12 = arith.constant 0 : index
    %26 = vector.load %arg3[%c0_10, %c0_11, %c0_12] : memref<1x8x32xf32, #tpu.memory_space<vmem>>, vector<1x8x32xf32>
    %27 = vector.shape_cast %26 : vector<1x8x32xf32> to vector<8x32xf32>
    %cst_13 = arith.constant dense<0.000000e+00> : vector<8xf32>
    %28 = vector.multi_reduction <add>, %27, %cst_13 [1] : vector<8x32xf32> to vector<8xf32>
    %29 = vector.shape_cast %28 : vector<8xf32> to vector<8x1xf32>
    %cst_14 = arith.constant 3.200000e+01 : f32
    %30 = vector.broadcast %cst_14 : f32 to vector<8x1xf32>
    %31 = arith.divf %29, %30 : vector<8x1xf32>
    %32 = vector.broadcast %31 : vector<8x1xf32> to vector<8x32xf32>
    %33 = arith.subf %27, %32 : vector<8x32xf32>
    %34 = arith.mulf %33, %33 : vector<8x32xf32>
    %cst_15 = arith.constant dense<0.000000e+00> : vector<8xf32>
    %35 = vector.multi_reduction <add>, %34, %cst_15 [1] : vector<8x32xf32> to vector<8xf32>
    %36 = vector.shape_cast %35 : vector<8xf32> to vector<8x1xf32>
    %cst_16 = arith.constant 3.200000e+01 : f32
    %37 = vector.broadcast %cst_16 : f32 to vector<8x1xf32>
    %38 = arith.divf %36, %37 : vector<8x1xf32>
    %39 = vector.broadcast %31 : vector<8x1xf32> to vector<8x32xf32>
    %40 = arith.subf %27, %39 : vector<8x32xf32>
    %cst_17 = arith.constant 9.99999997E-7 : f32
    %41 = vector.broadcast %cst_17 : f32 to vector<8x1xf32>
    %42 = arith.addf %38, %41 : vector<8x1xf32>
    %43 = math.rsqrt %42 : vector<8x1xf32>
    %44 = vector.broadcast %43 : vector<8x1xf32> to vector<8x32xf32>
    %45 = arith.mulf %40, %44 : vector<8x32xf32>
    %46 = vector.broadcast %0 : vector<1x32xf32> to vector<8x32xf32>
    %47 = arith.mulf %45, %46 : vector<8x32xf32>
    %48 = vector.broadcast %1 : vector<1x32xf32> to vector<8x32xf32>
    %49 = arith.addf %47, %48 : vector<8x32xf32>
    %c0_18 = arith.constant 0 : index
    %c0_19 = arith.constant 0 : index
    %50 = vector.load %arg6[%c0_18, %c0_19] : memref<32x32xf32, #tpu.memory_space<vmem>>, vector<32x32xf32>
    %cst_20 = arith.constant dense<0.000000e+00> : vector<8x32xf32>
    %51 = tpu.matmul %49, %50, %cst_20 {dimension_numbers = #tpu.dot_dimension_numbers<[1], [0], [0], [1], [0, 0, 1, 1], [], []>} : vector<8x32xf32>, vector<32x32xf32>, vector<8x32xf32> -> vector<8x32xf32>
    %c0_21 = arith.constant 0 : index
    %c0_22 = arith.constant 0 : index
    %52 = vector.load %arg7[%c0_21, %c0_22] : memref<1x32xf32, #tpu.memory_space<vmem>>, vector<1x32xf32>
    %53 = vector.broadcast %52 : vector<1x32xf32> to vector<8x32xf32>
    %54 = arith.addf %51, %53 : vector<8x32xf32>
    %cst_23 = arith.constant 0.353553385 : f32
    %55 = vector.broadcast %cst_23 : f32 to vector<8x32xf32>
    %56 = arith.mulf %54, %55 : vector<8x32xf32>
    %c0_24 = arith.constant 0 : index
    %c0_25 = arith.constant 0 : index
    %57 = vector.load %arg8[%c0_24, %c0_25] : memref<32x32xf32, #tpu.memory_space<vmem>>, vector<32x32xf32>
    %cst_26 = arith.constant dense<0.000000e+00> : vector<8x32xf32>
    %58 = tpu.matmul %25, %57, %cst_26 {dimension_numbers = #tpu.dot_dimension_numbers<[1], [0], [0], [1], [0, 0, 1, 1], [], []>} : vector<8x32xf32>, vector<32x32xf32>, vector<8x32xf32> -> vector<8x32xf32>
    %c0_27 = arith.constant 0 : index
    %c0_28 = arith.constant 0 : index
    %59 = vector.load %arg9[%c0_27, %c0_28] : memref<1x32xf32, #tpu.memory_space<vmem>>, vector<1x32xf32>
    %60 = vector.broadcast %59 : vector<1x32xf32> to vector<8x32xf32>
    %61 = arith.addf %58, %60 : vector<8x32xf32>
    %c0_29 = arith.constant 0 : index
    %c0_30 = arith.constant 0 : index
    %62 = vector.load %arg10[%c0_29, %c0_30] : memref<32x32xf32, #tpu.memory_space<vmem>>, vector<32x32xf32>
    %cst_31 = arith.constant dense<0.000000e+00> : vector<8x32xf32>
    %63 = tpu.matmul %25, %62, %cst_31 {dimension_numbers = #tpu.dot_dimension_numbers<[1], [0], [0], [1], [0, 0, 1, 1], [], []>} : vector<8x32xf32>, vector<32x32xf32>, vector<8x32xf32> -> vector<8x32xf32>
    %c0_32 = arith.constant 0 : index
    %c0_33 = arith.constant 0 : index
    %64 = vector.load %arg11[%c0_32, %c0_33] : memref<1x32xf32, #tpu.memory_space<vmem>>, vector<1x32xf32>
    %65 = vector.broadcast %64 : vector<1x32xf32> to vector<8x32xf32>
    %66 = arith.addf %63, %65 : vector<8x32xf32>
    %67 = tpu.transpose %56, [1, 0] : vector<8x32xf32> -> vector<32x8xf32>
    %68 = vector.shape_cast %67 : vector<32x8xf32> to vector<4x8x8xf32>
    %69 = tpu.transpose %68, [0, 2, 1] : vector<4x8x8xf32> -> vector<4x8x8xf32>
    %70 = tpu.transpose %61, [1, 0] : vector<8x32xf32> -> vector<32x8xf32>
    %71 = vector.shape_cast %70 : vector<32x8xf32> to vector<4x8x8xf32>
    %72 = tpu.transpose %71, [0, 2, 1] : vector<4x8x8xf32> -> vector<4x8x8xf32>
    %73 = tpu.transpose %66, [1, 0] : vector<8x32xf32> -> vector<32x8xf32>
    %74 = vector.shape_cast %73 : vector<32x8xf32> to vector<4x8x8xf32>
    %75 = tpu.transpose %74, [0, 2, 1] : vector<4x8x8xf32> -> vector<4x8x8xf32>
    "tpu.trace_start"() <{level = 10 : i32, message = "hqd,hkd->hqk"}> : () -> ()
    %cst_34 = arith.constant dense<0.000000e+00> : vector<4x8x8xf32>
    %76 = tpu.matmul %69, %72, %cst_34 {dimension_numbers = #tpu.dot_dimension_numbers<[2], [2], [1], [1], [0, 0, 0, 1, 1, 1], [0], [0]>} : vector<4x8x8xf32>, vector<4x8x8xf32>, vector<4x8x8xf32> -> vector<4x8x8xf32>
    "tpu.trace_stop"() : () -> ()
    %cst_35 = arith.constant dense<0xFF800000> : vector<4x8xf32>
    %77 = vector.multi_reduction <maximumf>, %76, %cst_35 [2] : vector<4x8x8xf32> to vector<4x8xf32>
    %78 = vector.shape_cast %77 : vector<4x8xf32> to vector<4x8x1xf32>
    %79 = vector.broadcast %78 : vector<4x8x1xf32> to vector<4x8x8xf32>
    %80 = arith.subf %76, %79 : vector<4x8x8xf32>
    %81 = math.exp %80 : vector<4x8x8xf32>
    %cst_36 = arith.constant dense<0.000000e+00> : vector<4x8xf32>
    %82 = vector.multi_reduction <add>, %81, %cst_36 [2] : vector<4x8x8xf32> to vector<4x8xf32>
    %83 = vector.shape_cast %82 : vector<4x8xf32> to vector<4x8x1xf32>
    %84 = tpu.reciprocal %83 : vector<4x8x1xf32> -> vector<4x8x1xf32>
    %85 = vector.broadcast %84 : vector<4x8x1xf32> to vector<4x8x8xf32>
    %86 = arith.mulf %81, %85 : vector<4x8x8xf32>
    "tpu.trace_start"() <{level = 10 : i32, message = "hqk,hkd->hqd"}> : () -> ()
    %cst_37 = arith.constant dense<0.000000e+00> : vector<4x8x8xf32>
    %87 = tpu.matmul %86, %75, %cst_37 {dimension_numbers = #tpu.dot_dimension_numbers<[2], [1], [1], [2], [0, 0, 0, 1, 1, 2], [0], [0]>} : vector<4x8x8xf32>, vector<4x8x8xf32>, vector<4x8x8xf32> -> vector<4x8x8xf32>
    "tpu.trace_stop"() : () -> ()
    %88 = tpu.transpose %87, [0, 2, 1] : vector<4x8x8xf32> -> vector<4x8x8xf32>
    %89 = vector.shape_cast %88 : vector<4x8x8xf32> to vector<32x8xf32>
    %90 = tpu.transpose %89, [1, 0] : vector<32x8xf32> -> vector<8x32xf32>
    %c0_38 = arith.constant 0 : index
    %c0_39 = arith.constant 0 : index
    %91 = vector.load %arg12[%c0_38, %c0_39] : memref<32x32xf32, #tpu.memory_space<vmem>>, vector<32x32xf32>
    %cst_40 = arith.constant dense<0.000000e+00> : vector<8x32xf32>
    %92 = tpu.matmul %90, %91, %cst_40 {dimension_numbers = #tpu.dot_dimension_numbers<[1], [0], [0], [1], [0, 0, 1, 1], [], []>} : vector<8x32xf32>, vector<32x32xf32>, vector<8x32xf32> -> vector<8x32xf32>
    %c0_41 = arith.constant 0 : index
    %c0_42 = arith.constant 0 : index
    %93 = vector.load %arg13[%c0_41, %c0_42] : memref<1x32xf32, #tpu.memory_space<vmem>>, vector<1x32xf32>
    %94 = vector.broadcast %93 : vector<1x32xf32> to vector<8x32xf32>
    %95 = arith.addf %92, %94 : vector<8x32xf32>
    %96 = arith.addf %27, %95 : vector<8x32xf32>
    %c0_43 = arith.constant 0 : index
    %c0_44 = arith.constant 0 : index
    %97 = vector.load %arg14[%c0_43, %c0_44] : memref<1x32xf32, #tpu.memory_space<vmem>>, vector<1x32xf32>
    %c0_45 = arith.constant 0 : index
    %c0_46 = arith.constant 0 : index
    %98 = vector.load %arg15[%c0_45, %c0_46] : memref<1x32xf32, #tpu.memory_space<vmem>>, vector<1x32xf32>
    %cst_47 = arith.constant dense<0.000000e+00> : vector<8xf32>
    %99 = vector.multi_reduction <add>, %96, %cst_47 [1] : vector<8x32xf32> to vector<8xf32>
    %100 = vector.shape_cast %99 : vector<8xf32> to vector<8x1xf32>
    %cst_48 = arith.constant 3.200000e+01 : f32
    %101 = vector.broadcast %cst_48 : f32 to vector<8x1xf32>
    %102 = arith.divf %100, %101 : vector<8x1xf32>
    %103 = vector.broadcast %102 : vector<8x1xf32> to vector<8x32xf32>
    %104 = arith.subf %96, %103 : vector<8x32xf32>
    %105 = arith.mulf %104, %104 : vector<8x32xf32>
    %cst_49 = arith.constant dense<0.000000e+00> : vector<8xf32>
    %106 = vector.multi_reduction <add>, %105, %cst_49 [1] : vector<8x32xf32> to vector<8xf32>
    %107 = vector.shape_cast %106 : vector<8xf32> to vector<8x1xf32>
    %cst_50 = arith.constant 3.200000e+01 : f32
    %108 = vector.broadcast %cst_50 : f32 to vector<8x1xf32>
    %109 = arith.divf %107, %108 : vector<8x1xf32>
    %110 = vector.broadcast %102 : vector<8x1xf32> to vector<8x32xf32>
    %111 = arith.subf %96, %110 : vector<8x32xf32>
    %cst_51 = arith.constant 9.99999997E-7 : f32
    %112 = vector.broadcast %cst_51 : f32 to vector<8x1xf32>
    %113 = arith.addf %109, %112 : vector<8x1xf32>
    %114 = math.rsqrt %113 : vector<8x1xf32>
    %115 = vector.broadcast %114 : vector<8x1xf32> to vector<8x32xf32>
    %116 = arith.mulf %111, %115 : vector<8x32xf32>
    %117 = vector.broadcast %97 : vector<1x32xf32> to vector<8x32xf32>
    %118 = arith.mulf %116, %117 : vector<8x32xf32>
    %119 = vector.broadcast %98 : vector<1x32xf32> to vector<8x32xf32>
    %120 = arith.addf %118, %119 : vector<8x32xf32>
    %c0_52 = arith.constant 0 : index
    %c0_53 = arith.constant 0 : index
    %121 = vector.load %arg16[%c0_52, %c0_53] : memref<32x128xf32, #tpu.memory_space<vmem>>, vector<32x128xf32>
    %cst_54 = arith.constant dense<0.000000e+00> : vector<8x128xf32>
    %122 = tpu.matmul %120, %121, %cst_54 {dimension_numbers = #tpu.dot_dimension_numbers<[1], [0], [0], [1], [0, 0, 1, 1], [], []>} : vector<8x32xf32>, vector<32x128xf32>, vector<8x128xf32> -> vector<8x128xf32>
    %c0_55 = arith.constant 0 : index
    %c0_56 = arith.constant 0 : index
    %123 = vector.load %arg17[%c0_55, %c0_56] : memref<1x128xf32, #tpu.memory_space<vmem>>, vector<1x128xf32>
    %124 = vector.broadcast %123 : vector<1x128xf32> to vector<8x128xf32>
    %125 = arith.addf %122, %124 : vector<8x128xf32>
    %cst_57 = arith.constant 5.000000e-01 : f32
    %126 = vector.broadcast %cst_57 : f32 to vector<8x128xf32>
    %127 = arith.mulf %126, %125 : vector<8x128xf32>
    %cst_58 = arith.constant 0.707106769 : f32
    %128 = vector.broadcast %cst_58 : f32 to vector<8x128xf32>
    %129 = arith.mulf %125, %128 : vector<8x128xf32>
    %130 = math.erf %129 : vector<8x128xf32>
    %cst_59 = arith.constant 1.000000e+00 : f32
    %131 = vector.broadcast %cst_59 : f32 to vector<8x128xf32>
    %132 = arith.addf %131, %130 : vector<8x128xf32>
    %133 = arith.mulf %127, %132 : vector<8x128xf32>
    %c0_60 = arith.constant 0 : index
    %c0_61 = arith.constant 0 : index
    %134 = vector.load %arg18[%c0_60, %c0_61] : memref<128x32xf32, #tpu.memory_space<vmem>>, vector<128x32xf32>
    %cst_62 = arith.constant dense<0.000000e+00> : vector<8x32xf32>
    %135 = tpu.matmul %133, %134, %cst_62 {dimension_numbers = #tpu.dot_dimension_numbers<[1], [0], [0], [1], [0, 0, 1, 1], [], []>} : vector<8x128xf32>, vector<128x32xf32>, vector<8x32xf32> -> vector<8x32xf32>
    %c0_63 = arith.constant 0 : index
    %c0_64 = arith.constant 0 : index
    %136 = vector.load %arg19[%c0_63, %c0_64] : memref<1x32xf32, #tpu.memory_space<vmem>>, vector<1x32xf32>
    %137 = vector.broadcast %136 : vector<1x32xf32> to vector<8x32xf32>
    %138 = arith.addf %135, %137 : vector<8x32xf32>
    %139 = arith.addf %96, %138 : vector<8x32xf32>
    %c0_65 = arith.constant 0 : index
    %c0_66 = arith.constant 0 : index
    %c0_67 = arith.constant 0 : index
    %140 = vector.load %arg20[%c0_65, %c0_66, %c0_67] : memref<1x8x32xf32, #tpu.memory_space<vmem>>, vector<1x8x32xf32>
    %141 = vector.shape_cast %140 : vector<1x8x32xf32> to vector<8x32xf32>
    %142 = vector.shape_cast %139 : vector<8x32xf32> to vector<1x8x32xf32>
    tpu.vector_store %arg20[%c0_65, %c0_66, %c0_67], %142 {strides = array<i32>} : memref<1x8x32xf32, #tpu.memory_space<vmem>>, vector<1x8x32xf32>,
    return
  }
  func.func @transform_0(%arg0: i32, %arg1: i32) -> (i32, i32, i32) {
    %c0_i32 = arith.constant 0 : i32
    %c0_i32_0 = arith.constant 0 : i32
    %c0_i32_1 = arith.constant 0 : i32
    return %arg0, %c0_i32, %c0_i32_0 : i32, i32, i32
  }
  func.func @transform_1(%arg0: i32, %arg1: i32) -> (i32, i32, i32) {
    %c0_i32 = arith.constant 0 : i32
    %c0_i32_0 = arith.constant 0 : i32
    return %arg0, %arg1, %c0_i32 : i32, i32, i32
  }
  func.func @transform_2(%arg0: i32, %arg1: i32) -> (i32, i32) {
    %c0_i32 = arith.constant 0 : i32
    %c0_i32_0 = arith.constant 0 : i32
    %c0_i32_1 = arith.constant 0 : i32
    return %c0_i32, %c0_i32_0 : i32, i32
  }
  func.func @transform_3(%arg0: i32, %arg1: i32) -> (i32, i32) {
    %c0_i32 = arith.constant 0 : i32
    %c0_i32_0 = arith.constant 0 : i32
    %c0_i32_1 = arith.constant 0 : i32
    return %c0_i32, %c0_i32_0 : i32, i32
  }
  func.func @transform_4(%arg0: i32, %arg1: i32) -> (i32, i32) {
    %c0_i32 = arith.constant 0 : i32
    %c0_i32_0 = arith.constant 0 : i32
    %c0_i32_1 = arith.constant 0 : i32
    return %c0_i32, %c0_i32_0 : i32, i32
  }
  func.func @transform_5(%arg0: i32, %arg1: i32) -> (i32, i32) {
    %c0_i32 = arith.constant 0 : i32
    %c0_i32_0 = arith.constant 0 : i32
    %c0_i32_1 = arith.constant 0 : i32
    return %c0_i32, %c0_i32_0 : i32, i32
  }
  func.func @transform_6(%arg0: i32, %arg1: i32) -> (i32, i32) {
    %c0_i32 = arith.constant 0 : i32
    %c0_i32_0 = arith.constant 0 : i32
    %c0_i32_1 = arith.constant 0 : i32
    return %c0_i32, %c0_i32_0 : i32, i32
  }
  func.func @transform_7(%arg0: i32, %arg1: i32) -> (i32, i32) {
    %c0_i32 = arith.constant 0 : i32
    %c0_i32_0 = arith.constant 0 : i32
    %c0_i32_1 = arith.constant 0 : i32
    return %c0_i32, %c0_i32_0 : i32, i32
  }
  func.func @transform_8(%arg0: i32, %arg1: i32) -> (i32, i32) {
    %c0_i32 = arith.constant 0 : i32
    %c0_i32_0 = arith.constant 0 : i32
    %c0_i32_1 = arith.constant 0 : i32
    return %c0_i32, %c0_i32_0 : i32, i32
  }
  func.func @transform_9(%arg0: i32, %arg1: i32) -> (i32, i32) {
    %c0_i32 = arith.constant 0 : i32
    %c0_i32_0 = arith.constant 0 : i32
    %c0_i32_1 = arith.constant 0 : i32
    return %c0_i32, %c0_i32_0 : i32, i32
  }
  func.func @transform_10(%arg0: i32, %arg1: i32) -> (i32, i32) {
    %c0_i32 = arith.constant 0 : i32
    %c0_i32_0 = arith.constant 0 : i32
    %c0_i32_1 = arith.constant 0 : i32
    return %c0_i32, %c0_i32_0 : i32, i32
  }
  func.func @transform_11(%arg0: i32, %arg1: i32) -> (i32, i32) {
    %c0_i32 = arith.constant 0 : i32
    %c0_i32_0 = arith.constant 0 : i32
    %c0_i32_1 = arith.constant 0 : i32
    return %c0_i32, %c0_i32_0 : i32, i32
  }
  func.func @transform_12(%arg0: i32, %arg1: i32) -> (i32, i32) {
    %c0_i32 = arith.constant 0 : i32
    %c0_i32_0 = arith.constant 0 : i32
    %c0_i32_1 = arith.constant 0 : i32
    return %c0_i32, %c0_i32_0 : i32, i32
  }
  func.func @transform_13(%arg0: i32, %arg1: i32) -> (i32, i32) {
    %c0_i32 = arith.constant 0 : i32
    %c0_i32_0 = arith.constant 0 : i32
    %c0_i32_1 = arith.constant 0 : i32
    return %c0_i32, %c0_i32_0 : i32, i32
  }
  func.func @transform_14(%arg0: i32, %arg1: i32) -> (i32, i32) {
    %c0_i32 = arith.constant 0 : i32
    %c0_i32_0 = arith.constant 0 : i32
    %c0_i32_1 = arith.constant 0 : i32
    return %c0_i32, %c0_i32_0 : i32, i32
  }
  func.func @transform_15(%arg0: i32, %arg1: i32) -> (i32, i32) {
    %c0_i32 = arith.constant 0 : i32
    %c0_i32_0 = arith.constant 0 : i32
    %c0_i32_1 = arith.constant 0 : i32
    return %c0_i32, %c0_i32_0 : i32, i32
  }
  func.func @transform_16(%arg0: i32, %arg1: i32) -> (i32, i32) {
    %c0_i32 = arith.constant 0 : i32
    %c0_i32_0 = arith.constant 0 : i32
    %c0_i32_1 = arith.constant 0 : i32
    return %c0_i32, %c0_i32_0 : i32, i32
  }
  func.func @transform_17(%arg0: i32, %arg1: i32) -> (i32, i32) {
    %c0_i32 = arith.constant 0 : i32
    %c0_i32_0 = arith.constant 0 : i32
    %c0_i32_1 = arith.constant 0 : i32
    return %c0_i32, %c0_i32_0 : i32, i32
  }
  func.func @transform_18(%arg0: i32, %arg1: i32) -> (i32, i32, i32) {
    %c0_i32 = arith.constant 0 : i32
    %c0_i32_0 = arith.constant 0 : i32
    return %arg0, %arg1, %c0_i32 : i32, i32, i32
  }
}

</mosaic_0001>

<bundles_post_ra>
// kernel: tpu_custom_call.1
= control target key start
LH: loop header
LB: loop body
LE: loop exit
PB: predicated region body
PF: predicated region fallthrough
CT: control target
= control target key end

     0   :  { %s2603_s0 = inlined_call_operand.hbm [shape: f32[2,8,32], index: 0, kind: input, shape index: {}]   ;;  %s2604_s1 = inlined_call_operand.hbm [shape: f32[2,8,32], index: 1, kind: input, shape index: {}]   ;;  %s2605_s2 = inlined_call_operand.vmem [shape: f32[1,32], index: 2, kind: input, shape index: {}]   ;;  %s2606_s3 = inlined_call_operand.hbm [shape: f32[1,32], index: 3, kind: input, shape index: {}]   ;;  %s2607_s4 = inlined_call_operand.vmem [shape: f32[32,32], index: 4, kind: input, shape index: {}]   ;;  %s2608_s5 = inlined_call_operand.vmem [shape: f32[1,32], index: 5, kind: input, shape index: {}]   ;;  %s2609_s6 = inlined_call_operand.vmem [shape: f32[32,32], index: 6, kind: input, shape index: {}]   ;;  %s2610_s7 = inlined_call_operand.vmem [shape: f32[1,32], index: 7, kind: input, shape index: {}]   ;;  %s2611_s8 = inlined_call_operand.vmem [shape: f32[32,32], index: 8, kind: input, shape index: {}]   ;;  %s2612_s9 = inlined_call_operand.vmem [shape: f32[1,32], index: 9, kind: input, shape index: {}]   ;;  %s2613_s10 = inlined_call_operand.vmem [shape: f32[32,32], index: 10, kind: input, shape index: {}]   ;;  %s2614_s11 = inlined_call_operand.vmem [shape: f32[1,32], index: 11, kind: input, shape index: {}]   ;;  %s2615_s12 = inlined_call_operand.vmem [shape: f32[1,32], index: 12, kind: input, shape index: {}]   ;;  %s2616_s13 = inlined_call_operand.vmem [shape: f32[1,32], index: 13, kind: input, shape index: {}]   ;;  %s2617_s14 = inlined_call_operand.vmem [shape: f32[32,128], index: 14, kind: input, shape index: {}]   ;;  %s2618_s15 = inlined_call_operand.vmem [shape: f32[1,128], index: 15, kind: input, shape index: {}]   ;;  %s2619_s16 = inlined_call_operand.vmem [shape: f32[128,32], index: 16, kind: input, shape index: {}]   ;;  %s2620_s17 = inlined_call_operand.vmem [shape: f32[1,32], index: 17, kind: input, shape index: {}]   ;;  %s2621_s18 = inlined_call_operand.hbm [shape: f32[2,8,32], index: 18, kind: output, shape index: {}]  }
   0x1   :  { %2632 = sst [smem:[#allocation20_spill]] %s2603_s0 }
   0x2   :  { %2633 = sst [smem:[#allocation21_spill]] %s2604_s1 }
   0x3   :  { %2634 = sst [smem:[#allocation22_spill]] %s2605_s2 }
   0x4   :  { %2635 = sst [smem:[#allocation23_spill]] %s2606_s3 }
   0x5   :  { %2636 = sst [smem:[#allocation24_spill]] %s2612_s9 }
   0x6   :  { %2637 = sst [smem:[#allocation25_spill]] %s2613_s10 }
   0x7   :  { %2638 = sst [smem:[#allocation26_spill]] %s2614_s11 }
   0x8   :  { %2639 = sst [smem:[#allocation27_spill]] %s2615_s12 }
   0x9   :  { %2640 = sst [smem:[#allocation28_spill]] %s2616_s13 }
   0xa   :  { %2641 = sst [smem:[#allocation29_spill]] %s2617_s14 }
   0xb   :  { %2642 = sst [smem:[#allocation30_spill]] %s2618_s15 }
   0xc   :  { %2643 = sst [smem:[#allocation31_spill]] %s2619_s16 }
   0xd   :  { %2644 = sst [smem:[#allocation32_spill]] %s2620_s17 }
   0xe   :  { %2645 = sst [smem:[#allocation33_spill]] %s2621_s18 }
   0xf   :  { %23 = vsyncpa [#allocation3], 0 }
  0x10   :  { %25 = vsyncpa [#allocation3 + $0x1], 0 }
  0x11   :  { %26 = vsyncpa [#allocation6], 0 }
  0x12   :  { %28 = vsyncpa [#allocation6 + $0x1], 0 }
  0x13   :  { %29 = vsyncpa [#allocation4], 0 }
  0x14   :  { %31 = vsyncpa [#allocation4 + $0x1], 0  ;;  %s2238_s27 = smov 0   ;;  %s2240_s28 = smov 0  }
  0x15   :  { %s2242_s29 = smov 0   ;;  %s2244_s30 = smov 0  }
  0x16   :  { %s2246_s0 = smov 0   ;;  %s2248_s19 = smov 0  }
  0x17 LB: > { %2646 = sst [smem:[#allocation13_spill]] %s2119_s27  ;;  %s2269_s1 = sadd.s32 4294967295, %s2139_s19   ;;  %s2139_s19 = sphi %s2248_s19, %s37_s19   ;;  %s2135_s0 = sphi %s2246_s0, %s2683_s0   ;;  %s2131_s30 = sphi %s2244_s30, %s2682_s30   ;;  %s2127_s29 = sphi %s2242_s29, %s2681_s29   ;;  %s2123_s28 = sphi %s2240_s28, %s2680_s28   ;;  %s2119_s27 = sphi %s2238_s27, %s2679_s27  }
  0x18   : > { %2647 = sst [smem:[#allocation14_spill]] %s2131_s30  ;;  %s1808_s20 = sadd.s32 4294967294, %s2139_s19  }
  0x19   : > { %2648 = sst [smem:[#allocation15_spill]] %s2135_s0  ;;  %p69_p0 = scmp.ne.s32.totalorder %s2123_s28, %s2119_s27 }
  0x1a   : > { %p70_p1 = scmp.eq.s32.totalorder %s2269_s1, 0  ;;  %p459_p2 = scmp.eq.s32.totalorder %s2269_s1, 1 }
  0x1b   : > { %p465_p3 = scmp.eq.s32.totalorder %s1808_s20, 1  ;;  %p1809_p5 = scmp.ge.s32.totalorder %s2139_s19, 1 }
  0x1c   : > { %p2278_p4 = por %p70_p1, %p69_p0  ;;  %p472_p7 = scmp.lt.s32.totalorder %s2139_s19, 3 }
  0x1d   : > { %p2283_p6 = por %p465_p3, %p69_p0  ;;  %s2652_s3 = sld [smem:[#allocation23_spill]] }
  0x1e   : > { %p2291_p8 = pnand %p1809_p5, %p472_p7  ;;  %p1811_p9 = scmp.ge.s32.totalorder %s2139_s19, 2 }
  0x1f   : > { %s2650_s22 = scalar_select %p2283_p6, 1, 0 }
  0x20   : > { %p1853_p10 = pneg %p2291_p8  ;;  %s2141_s26 = smov [#allocation7]  }
  0x21   : > { %2651 = sst [smem:[#allocation16_spill]] %s2650_s22  ;;  %s489_s20 = sshll.u32 %s2141_s26, 4  ;;  %s490_s20 = int_to_ptr.vmem [resolvable:$true] %s489_s20 }
  0x22   : > { %p1854_p11 = pnand %p1853_p10, %p70_p1  ;;  %s49_s2 = sadd.s32 1, %s2135_s0 }
  0x23   : > { %s487_s24 = sshll.u32 %s2652_s3, 4  ;;  %p51_p12 = scmp.ge.s32.totalorder %s49_s2, 2  ;;  %s488_s24 = int_to_ptr.hbm [resolvable:$true] %s487_s24 }
  0x24   : > { %1856 = dma.hbm_to_vmem [thread:$0]  (!%p1854_p11), %s488_s24, 16, %s490_s20, [#allocation6]  }
  0x25   : > { %s56_s23 = sadd.s32 1, %s2127_s29  ;;  %p63_p13 = scmp.ne.s32.totalorder %s2127_s29, %s2123_s28 }
  0x26   : > { %p64_p0 = scmp.eq.s32.totalorder %s2139_s19, 0  ;;  %s2685_s2 = smov (%p51_p12, %s49_s2), 0 }
  0x27   : > { %2654 = sst [smem:[#allocation17_spill]] %s2685_s2  ;;  %p2313_p5 = por %p459_p2, %p63_p13 }
  0x28   : > { %p2307_p3 = por %p64_p0, %p63_p13  ;;  %s53_s22 = ssub.s32 %s2135_s0, %s2685_s2 }
  0x29   : > { %s2656_s26 = scalar_select %p2313_p5, 1, 0 }
  0x2a   : > { %p1869_p7 = scmp.lt.s32.totalorder %s2139_s19, 2  ;;  %p54_p10 = scmp.eq.s32.totalorder %s53_s22, 0 }
  0x2b   : > { %2657 = sst [smem:[#allocation18_spill]] %s2656_s26  ;;  %s542_s24 = sand.u32 1, %s2127_s29  }
  0x2c   : > { %s1812_s20 = sshll.u32 %s542_s24, 3  ;;  %s1813_s18 = sshll.u32 %s2135_s0, 3 }
  0x2d   : > { %s2322_s27 = scalar_select %p54_p10, %s2127_s29, %s56_s23  }
  0x2e   : > { %s2659_s15 = sld [smem:[#allocation20_spill]]  ;;  %s546_s13 = scalar_lea.vmem [#allocation2], %s1812_s20 }
  0x2f   : > { %2658 = sst [smem:[#allocation19_spill]] %s2322_s27  ;;  %s554_s12 = sshll.u32 %s546_s13, 4  ;;  %s555_s12 = int_to_ptr.vmem [resolvable:$true] %s554_s12 }
  0x30   : > { %p1858_p2 = pnand %p1869_p7, %p2307_p3  ;;  %s2660_s11 = sld [smem:[#allocation21_spill]] }
  0x31   : > { %s561_s10 = sand.u32 1, %s2139_s19   ;;  %s543_s9 = scalar_lea.sflag [#allocation3], %s542_s24 }
  0x32   : > { %s565_s0 = scalar_lea.vmem [#allocation5], %s1812_s20  ;;  %s2337_s3 = sand.u32 (!%p2291_p8), 1, %s2123_s28  }
  0x33   : > { %s574_s27 = sshll.u32 %s565_s0, 4  ;;  %s575_s27 = int_to_ptr.vmem [resolvable:$true] %s574_s27 }
  0x34   : > { %s550_s16 = scalar_lea.hbm %s2659_s15, %s1813_s18  ;;  %s562_s15 = scalar_lea.sflag [#allocation6], %s561_s10 }
  0x35   : > { %s552_s14 = sshll.u32 %s550_s16, 4  ;;  %583 = sbr.rel (%p2291_p8) target bundleno = 2451 (0x993), region = 92  ;;  %s553_s14 = int_to_ptr.hbm [resolvable:$true] %s552_s14 }
  0x36   : > { %s570_s22 = scalar_lea.hbm %s2660_s11, %s1813_s18  ;;  %s2340_s11 = sshll.u32 (!%p2291_p8), %s2337_s3, 3 }
  0x37   : > { %1860 = dma.hbm_to_vmem [thread:$0]  (!%p1858_p2), %s553_s14, 128, %s555_s12, %s543_s9  }
  0x38   : > { %s572_s23 = sshll.u32 %s570_s22, 4  ;;  %s586_s9 = scalar_lea.sflag (!%p2291_p8), [#allocation3], %s2337_s3  ;;  %s573_s23 = int_to_ptr.hbm [resolvable:$true] %s572_s23 }
  0x39   : > { %1863 = dma.hbm_to_vmem [thread:$0]  (!%p1858_p2), %s573_s23, 128, %s575_s27, %s562_s15  }
  0x3a   : > { %s589_s12 = scalar_lea.vmem [#allocation2], %s2340_s11 }
  0x3b   : > { %2102 = dma.done.wait (%p2278_p4), %s586_s9, 128  }
  0x3c   : > { %2104 = vsyncadd (%p2278_p4), %s586_s9, 4294967168  ;;  %s595_s10 = sand.u32 1, %s2269_s1   ;;  %s599_s14 = scalar_lea.vmem [#allocation5], %s2340_s11 }
  0x3d   : > { %s596_s13 = scalar_lea.sflag [#allocation6], %s595_s10 }
  0x3e   : > { %2106 = dma.done.wait (%p2278_p4), %s596_s13, 128  }
  0x3f   : > { %2108 = vsyncadd (%p2278_p4), %s596_s13, 4294967168 }
  0x40   : > { %2110 = dma.done.wait (%p70_p1), [#allocation6], 16  }
  0x41   : > { %2112 = vsyncadd (%p70_p1), [#allocation6], 4294967280  ;;  %vm666_vm0 = vcmask 261120   ;;  %v2358_v0 = vld [vmem:[%s599_s14] sm:$0xff]  ;;  %v665_v2 = vld [vmem:[%s589_s12] sm:$0xff]  ;;  %v2142_v4 = vmov 32.0  }
  0x42   : > { %v705_v1 = vsel %vm666_vm0, %v2358_v0, 0.0  ;;  %v667_v3 = vsel %vm666_vm0, %v665_v2, 0.0  ;;  %1933 = vrcp.f32 %v2142_v4  ;;  %v732_v21 = vld [vmem:[%s2607_s4 + $0x18] sm:$0xff]  ;;  %v731_v22 = vld [vmem:[%s2607_s4 + $0x10] sm:$0xff]  ;;  %v730_v23 = vld [vmem:[%s2607_s4 + $0x8] sm:$0xff]  ;;  %s2661_s0 = sld [smem:[#allocation22_spill]] }
  0x43   : > { %706 = vadd.xlane.f32.xlu0 %v705_v1  ;;  %752 = vmatpush.msra.mxu1 %v732_v21  ;;  %v729_v24 = vld [vmem:[%s2607_s4] sm:$0xff]  ;;  %v764_v25 = vld [vmem:[%s2609_s6 + $0x18] sm:$0xff]  ;;  %v763_v27 = vld [vmem:[%s2609_s6 + $0x10] sm:$0xff]  ;;  %vm1044_vm8 = vcmask 64512   ;;  %s2662_s20 = sld [smem:[#allocation24_spill]]  ;;  %s662_s26 = scalar_lea.vmem [#allocation8], %s2340_s11 }
  0x44   : > { %v795_v26 = vld [vmem:[%s2611_s8 + $0x18] sm:$0xff]  ;;  %v794_v29 = vld [vmem:[%s2611_s8 + $0x10] sm:$0xff]  ;;  %v762_v31 = vld [vmem:[%s2609_s6 + $0x8] sm:$0xff]  ;;  %s2663_s15 = sld [smem:[#allocation25_spill]]  ;;  %s1692_s24 = sshll.u32 %s662_s26, 4  ;;  %s1693_s24 = int_to_ptr.vmem [resolvable:$true] %s1692_s24 }
  0x45   : > { %753 = vmatpush.msra.mxu1 %v731_v22  ;;  %812 = vmatpush.msra.mxu2 %v795_v26  ;;  %v793_v32 = vld [vmem:[%s2611_s8 + $0x8] sm:$0xff]  ;;  %v761_v34 = vld [vmem:[%s2609_s6] sm:$0xff]  ;;  %s2664_s27 = sld [smem:[#allocation26_spill]]  ;;  %s1679_s22 = scalar_lea.sflag [#allocation4], %s2337_s3 }
  0x46   : > { %v792_v35 = vld [vmem:[%s2611_s8] sm:$0xff]  ;;  %s2665_s1 = sld [smem:[#allocation29_spill]] }
  0x47   : > { %754 = vmatpush.msra.mxu1 %v730_v23  ;;  %813 = vmatpush.msra.mxu2 %v794_v29  ;;  %v1924_v50 = vld [vmem:[#allocation7] ss:$0 sm:$0xff]  ;;  %s2666_s9 = sld [smem:[#allocation27_spill]] }
  0x48   : > { %v1934_v5 = vpop.eup %1933  ;;  %v1923_v47 = vld [vmem:[%s2661_s0] ss:$0 sm:$0xff]  ;;  %s2667_s13 = sld [smem:[#allocation28_spill]] }
  0x49   : > { %v671_v6 = vmul.f32 32.0, %v1934_v5  ;;  %vm675_vm1 = vweird.f32 %v1934_v5  ;;  %755 = vmatpush.msra.mxu1 %v729_v24  ;;  %814 = vmatpush.msra.mxu2 %v793_v32  ;;  %v1925_v61 = vld [vmem:[%s2608_s5] ss:$0 sm:$0xff]  ;;  %s2668_s17 = sld [smem:[#allocation31_spill]] }
  0x4a   : > { %s2669_s2 = sld [smem:[#allocation30_spill]] }
  0x4b   : > { %668 = vadd.xlane.f32.xlu0 %v667_v3  ;;  %v672_v7 = vsub.f32 1.0, %v671_v6  ;;  %784 = vmatpush.msrb.mxu1 %v764_v25  ;;  %s2672_s21 = sld [smem:[#allocation33_spill]] }
  0x4c   : > { %815 = vmatpush.msra.mxu2 %v792_v35 }
  0x4d   : > { %v673_v8 = vmul.f32 %v1934_v5, %v672_v7  ;;  %785 = vmatpush.msrb.mxu1 %v763_v27 }
  0x4f   : > { %v674_v9 = vadd.f32 %v1934_v5, %v673_v8  ;;  %786 = vmatpush.msrb.mxu1 %v762_v31 }
  0x51   : > { %v2363_v10 = vsel %vm675_vm1, %v1934_v5, %v674_v9  ;;  %787 = vmatpush.msrb.mxu1 %v761_v34  ;;  %s2069_s11 = scalar_lea.hbm %s2672_s21, 16 }
  0xb6   : > { %v707_v11 = vpop.xlane.xlu0 %706 }
  0xb7   : > { %v708_v12 = vmul.f32 %v707_v11, %v2363_v10 }
  0xb9   : > { %v709_v13 = vsub.f32 %v2358_v0, %v708_v12 }
  0xbb   : > { %v710_v14 = vmul.f32 %v709_v13, %v709_v13 }
  0xbd   : > { %v711_v15 = vsel %vm666_vm0, %v710_v14, 0.0 }
  0xbe   : > { %712 = vadd.xlane.f32.xlu1 %v711_v15  ;;  %v669_v16 = vpop.xlane.xlu0 %668 }
  0xbf   : > { %v677_v17 = vmul.f32 %v2363_v10, %v669_v16 }
  0xc1   : > { %v2369_v18 = vsub.f32 %v665_v2, %v677_v17  ;;  %v1926_v2 = vld [vmem:[%s2610_s7] ss:$0 sm:$0xff] }
  0xc3   : > { %v679_v19 = vmul.f32 %v2369_v18, %v2369_v18 }
  0xc5   : > { %v680_v20 = vsel %vm666_vm0, %v679_v19, 0.0 }
  0xc6   : > { %681 = vadd.xlane.f32.xlu1 %v680_v20 }
 0x131   : > { %v713_v28 = vpop.xlane.xlu1 %712 }
 0x132   : > { %v714_v30 = vmul.f32 %v713_v28, %v2363_v10 }
 0x134   : > { %v715_v33 = vadd.f32 1e-06, %v714_v30 }
 0x136   : > { %1935 = vrsqrt.f32 %v715_v33  ;;  %vm722_vm3 = vweird.f32 %v715_v33 }
 0x139   : > { %v682_v36 = vpop.xlane.xlu1 %681 }
 0x13a   : > { %v683_v37 = vmul.f32 %v682_v36, %v2363_v10 }
 0x13c   : > { %v1936_v38 = vpop.eup %1935  ;;  %v684_v39 = vadd.f32 1e-06, %v683_v37 }
 0x13d   : > { %v717_v40 = vmul.f32 %v1936_v38, %v715_v33  ;;  %vm723_vm2 = vweird.f32 %v1936_v38 }
 0x13e   : > { %1937 = vrsqrt.f32 %v684_v39  ;;  %vm724_vm4 = vmor %vm722_vm3, %vm723_vm2  ;;  %vm691_vm5 = vweird.f32 %v684_v39 }
 0x13f   : > { %v718_v41 = vmul.f32 %v1936_v38, %v717_v40 }
 0x141   : > { %v719_v42 = vmul.f32 0.5, %v718_v41 }
 0x143   : > { %v720_v43 = vsub.f32 1.5, %v719_v42 }
 0x144   : > { %v1938_v44 = vpop.eup %1937 }
 0x145   : > { %v721_v45 = vmul.f32 %v1936_v38, %v720_v43  ;;  %v686_v46 = vmul.f32 %v1938_v44, %v684_v39  ;;  %vm692_vm6 = vweird.f32 %v1938_v44 }
 0x146   : > { %vm693_vm7 = vmor %vm691_vm5, %vm692_vm6 }
 0x147   : > { %v725_v48 = vsel %vm724_vm4, %v1936_v38, %v721_v45  ;;  %v687_v49 = vmul.f32 %v1938_v44, %v686_v46  ;;  %v1927_v46 = vld [vmem:[%s2662_s20] ss:$0 sm:$0xff] }
 0x148   : > { %v726_v51 = vmul.f32 %v725_v48, %v709_v13 }
 0x149   : > { %v688_v52 = vmul.f32 0.5, %v687_v49 }
 0x14a   : > { %v727_v53 = vmul.f32 %v1923_v47, %v726_v51 }
 0x14b   : > { %v689_v54 = vsub.f32 1.5, %v688_v52 }
 0x14c   : > { %v728_v55 = vadd.f32 %v1924_v50, %v727_v53 }
 0x14d   : > { %v690_v56 = vmul.f32 %v1938_v44, %v689_v54 }
 0x14e   : > { %1821 = vmatmul.msk.f32.vlgmr.msra.gmra.mxu1 %vm666_vm0, %v728_v55 }
 0x14f   : > { %v694_v57 = vsel %vm693_vm7, %v1938_v44, %v690_v56 }
 0x150   : > { %v695_v58 = vmul.f32 %v694_v57, %v2369_v18 }
 0x152   : > { %v699_v59 = vmul.f32 %v1923_v47, %v695_v58 }
 0x154   : > { %v703_v60 = vadd.f32 %v1924_v50, %v699_v59 }
 0x156   : > { %1822 = vmatmul.msk.f32.vlgmr.msrb.gmra.mxu1 %vm666_vm0, %v703_v60  ;;  %1823 = vmatmul.msk.f32.vlgmr.msra.gmra.mxu2 %vm666_vm0, %v703_v60 }
 0x1cb   : > { %v757_v62 = vpop.f32.mrf.mxu1 }
 0x1cc   : > { %v758_v63 = vadd.f32 %v1925_v61, %v757_v62 }
 0x1ce   : > { %v760_v1 = vmul.f32 0.35355338, %v758_v63 }
 0x1d0   : > { %820 = vxpose.xlu2.b32.start.end [1/1] (short) (narrow) %v760_v1, 32 }
 0x1d3   : > { %v789_v3 = vpop.f32.mrf.mxu1 }
 0x1d4   : > { %v790_v4 = vadd.f32 %v1926_v2, %v789_v3 }
 0x1d9   : > { %v817_v47 = vpop.f32.mrf.mxu2 }
 0x1da   : > { %v818_v48 = vadd.f32 %v1927_v46, %v817_v47  ;;  %v1498_v46 = vld [vmem:[%s2663_s15 + $0x8] sm:$0xff]  ;;  %v1497_v47 = vld [vmem:[%s2663_s15] sm:$0xff] }
 0x1f0   : > { %980 = vxpose.xlu2.b32.start.end [1/1] (short) (narrow) %v790_v4, 32 }
 0x269   : > { %v836_v5 = vpop.trf.xlu2 }
 0x26a   : > { %852 = vxpose.xlu0.b32.start.end [1/1] (short) (narrow) %v836_v5, 8 }
 0x271   : > { %v837_v6 = vpop.trf.xlu2 }
 0x272   : > { %884 = vxpose.xlu1.b32.start.end [1/1] (short) (narrow) %v837_v6, 8 }
 0x279   : > { %v838_v7 = vpop.trf.xlu2 }
 0x27a   : > { %916 = vxpose.xlu2.b32.start.end [1/1] (short) (narrow) %v838_v7, 8 }
 0x281   : > { %v839_v8 = vpop.trf.xlu2 }
 0x282   : > { %948 = vxpose.xlu0.b32.start.end [1/1] (short) (narrow) %v839_v8, 8 }
 0x289   : > { %v996_v9 = vpop.trf.xlu2 }
 0x28a   : > { %1063 = vmatpush.msra.mxu3 %v996_v9 }
 0x291   : > { %v997_v11 = vpop.trf.xlu2 }
 0x292   : > { %1086 = vmatpush.msrb.mxu3 %v997_v11 }
 0x299   : > { %v998_v12 = vpop.trf.xlu2 }
 0x29a   : > { %1109 = vmatpush.msra.mxu0 %v998_v12 }
 0x2a1   : > { %v999_v13 = vpop.trf.xlu2 }
 0x2a2   : > { %1132 = vmatpush.msra.mxu1 %v999_v13 }
 0x30e   : > { %v868_v14 = vpop.trf.xlu0 }
 0x30f   : > { %1824 = vmatmul.msk.f32.vlgmr.msra.gmra.mxu3 %vm1044_vm8, %v868_v14 }
 0x313   : > { %v932_v15 = vpop.trf.xlu2 }
 0x314   : > { %1826 = vmatmul.msk.f32.vlgmr.msra.gmra.mxu0 %vm1044_vm8, %v932_v15 }
 0x316   : > { %v900_v16 = vpop.trf.xlu1 }
 0x317   : > { %1825 = vmatmul.msk.f32.vlgmr.msrb.gmra.mxu3 %vm1044_vm8, %v900_v16 }
 0x326   : > { %v964_v17 = vpop.trf.xlu0 }
 0x327   : > { %1827 = vmatmul.msk.f32.vlgmr.msra.gmra.mxu1 %vm1044_vm8, %v964_v17 }
 0x391   : > { %v1111_v18 = vpop.f32.mrf.mxu0 }
 0x392   : > { %v1065_v19 = vpop.f32.mrf.mxu3  ;;  %v1143_v20 = vsel %vm1044_vm8, %v1111_v18, -inf }
 0x393   : > { %1144 = vmax.xlane.f32.xlu1 %v1143_v20  ;;  %v1137_v21 = vsel %vm1044_vm8, %v1065_v19, -inf }
 0x394   : > { %1138 = vmax.xlane.f32.xlu0 %v1137_v21 }
 0x39a   : > { %v1088_v22 = vpop.f32.mrf.mxu3 }
 0x39b   : > { %v1140_v23 = vsel %vm1044_vm8, %v1088_v22, -inf }
 0x39c   : > { %1141 = vmax.xlane.f32.xlu2 %v1140_v23 }
 0x3a4   : > { %v1134_v24 = vpop.f32.mrf.mxu1 }
 0x3a5   : > { %v1146_v25 = vsel %vm1044_vm8, %v1134_v24, -inf }
 0x3a6   : > { %1147 = vmax.xlane.f32.xlu1 %v1146_v25 }
 0x406   : > { %v1145_v26 = vpop.xlane.xlu1 %1144 }
 0x407   : > { %v1151_v27 = vsub.f32 %v1111_v18, %v1145_v26  ;;  %v1139_v28 = vpop.xlane.xlu0 %1138 }
 0x408   : > { %v1149_v29 = vsub.f32 %v1065_v19, %v1139_v28 }
 0x409   : > { %v1157_v30 = vmul.f32 1.442695, %v1151_v27 }
 0x40a   : > { %v1153_v31 = vmul.f32 1.442695, %v1149_v29 }
 0x40b   : > { %1939 = vpow2.f32 %v1157_v30 }
 0x40c   : > { %1941 = vpow2.f32 %v1153_v31 }
 0x40f   : > { %v1142_v32 = vpop.xlane.xlu2 %1141 }
 0x410   : > { %v1150_v33 = vsub.f32 %v1088_v22, %v1142_v32 }
 0x411   : > { %v2433_v34 = vpop.eup %1939 }
 0x412   : > { %v1942_v35 = vpop.eup %1941  ;;  %v1155_v36 = vmul.f32 1.442695, %v1150_v33  ;;  %v1167_v37 = vsel %vm1044_vm8, %v2433_v34, 0.0 }
 0x413   : > { %1168 = vadd.xlane.f32.xlu2 %v1167_v37  ;;  %v1161_v38 = vsel %vm1044_vm8, %v1942_v35, 0.0 }
 0x414   : > { %1943 = vpow2.f32 %v1155_v36  ;;  %1162 = vadd.xlane.f32.xlu0 %v1161_v38 }
 0x419   : > { %v1148_v39 = vpop.xlane.xlu1 %1147 }
 0x41a   : > { %v2438_v40 = vpop.eup %1943  ;;  %v1152_v41 = vsub.f32 %v1134_v24, %v1148_v39 }
 0x41b   : > { %v1164_v42 = vsel %vm1044_vm8, %v2438_v40, 0.0 }
 0x41c   : > { %v1159_v43 = vmul.f32 1.442695, %v1152_v41  ;;  %1165 = vadd.xlane.f32.xlu1 %v1164_v42 }
 0x41e   : > { %1945 = vpow2.f32 %v1159_v43 }
 0x424   : > { %v2442_v44 = vpop.eup %1945 }
 0x425   : > { %v1170_v45 = vsel %vm1044_vm8, %v2442_v44, 0.0 }
 0x426   : > { %1171 = vadd.xlane.f32.xlu0 %v1170_v45  ;;  %v1500_v45 = vld [vmem:[%s2663_s15 + $0x18] sm:$0xff] }
 0x456   : > { %1012 = vxpose.xlu1.b32.start.end [1/1] (short) (narrow) %v818_v48, 32 }
 0x486   : > { %v1169_v53 = vpop.xlane.xlu2 %1168 }
 0x487   : > { %v1163_v49 = vpop.xlane.xlu0 %1162  ;;  %v1212_v22 = vand.u32 2147483648, %v1169_v53  ;;  %vm1206_vm3 = vweird.f32 %v1169_v53  ;;  %v1210_v23 = vand.u32 2147483647, %v1169_v53 }
 0x488   : > { %1947 = vrcp.f32 %v1163_v49  ;;  %v1184_v62 = vand.u32 2147483648, %v1163_v49  ;;  %vm1178_vm10 = vweird.f32 %v1163_v49  ;;  %v1182_v63 = vand.u32 2147483647, %v1163_v49 }
 0x489   : > { %v1213_v27 = vor.u32 1.1754944e-38, %v1212_v22  ;;  %vm1211_vm5 = vcmp.eq.f32.partialorder %v1210_v23, 8.507059e+37  ;;  %v1647_v22 = vld [vmem:[%s2668_s17 + $0x58] sm:$0xff] }
 0x48a   : > { %v1185_v4 = vor.u32 1.1754944e-38, %v1184_v62  ;;  %vm1183_vm12 = vcmp.eq.f32.partialorder %v1182_v63, 8.507059e+37  ;;  %v1564_v62 = vld [vmem:[%s2665_s1 + $0x18] sm:$0xff]  ;;  %v1562_v63 = vld [vmem:[%s2665_s1 + $0x8] sm:$0xff] }
 0x48e   : > { %v1948_v51 = vpop.eup %1947 }
 0x48f   : > { %v1166_v50 = vpop.xlane.xlu1 %1165  ;;  %v1174_v52 = vmul.f32 %v1948_v51, %v1163_v49  ;;  %vm1179_vm9 = vweird.f32 %v1948_v51 }
 0x490   : > { %1949 = vrcp.f32 %v1166_v50  ;;  %vm1180_vm11 = vmor %vm1178_vm10, %vm1179_vm9  ;;  %v1198_v11 = vand.u32 2147483648, %v1166_v50  ;;  %vm1192_vm14 = vweird.f32 %v1166_v50  ;;  %v1196_v12 = vand.u32 2147483647, %v1166_v50 }
 0x491   : > { %v1175_v54 = vsub.f32 1.0, %v1174_v52  ;;  %1951 = vrcp.f32 %v1169_v53  ;;  %v1928_v52 = vld [vmem:[%s2664_s27] ss:$0 sm:$0xff]  ;;  %s2671_s27 = sld [smem:[#allocation32_spill]] }
 0x492   : > { %v1199_v17 = vor.u32 1.1754944e-38, %v1198_v11  ;;  %vm1197_vm1 = vcmp.eq.f32.partialorder %v1196_v12, 8.507059e+37  ;;  %v1929_v12 = vld [vmem:[%s2666_s9] ss:$0 sm:$0xff] }
 0x493   : > { %v1176_v56 = vmul.f32 %v1948_v51, %v1175_v54 }
 0x495   : > { %v1177_v58 = vadd.f32 %v1948_v51, %v1176_v56 }
 0x496   : > { %v1950_v55 = vpop.eup %1949 }
 0x497   : > { %v1188_v57 = vmul.f32 %v1950_v55, %v1166_v50  ;;  %v1952_v61 = vpop.eup %1951  ;;  %v1181_v3 = vsel %vm1180_vm11, %v1948_v51, %v1177_v58  ;;  %vm1193_vm13 = vweird.f32 %v1950_v55 }
 0x498   : > { %v1202_v1 = vmul.f32 %v1952_v61, %v1169_v53  ;;  %v1186_v5 = vsel %vm1183_vm12, %v1185_v4, %v1181_v3  ;;  %vm1194_vm15 = vmor %vm1192_vm14, %vm1193_vm13  ;;  %vm1207_vm2 = vweird.f32 %v1952_v61 }
 0x499   : > { %v1189_v59 = vsub.f32 1.0, %v1188_v57  ;;  %v1172_v60 = vpop.xlane.xlu0 %1171  ;;  %v1229_v13 = vmul.f32 %v1942_v35, %v1186_v5  ;;  %vm1208_vm4 = vmor %vm1206_vm3, %vm1207_vm2 }
 0x49a   : > { %1953 = vrcp.f32 %v1172_v60  ;;  %v1203_v6 = vsub.f32 1.0, %v1202_v1  ;;  %v1226_v31 = vand.u32 2147483648, %v1172_v60  ;;  %vm1220_vm7 = vweird.f32 %v1172_v60  ;;  %v1561_v1 = vld [vmem:[%s2665_s1] sm:$0xff] }
 0x49b   : > { %v1190_v2 = vmul.f32 %v1950_v55, %v1189_v59  ;;  %v1224_v32 = vand.u32 2147483647, %v1172_v60 }
 0x49c   : > { %v1204_v14 = vmul.f32 %v1952_v61, %v1203_v6  ;;  %v1227_v36 = vor.u32 1.1754944e-38, %v1226_v31  ;;  %v1643_v31 = vld [vmem:[%s2668_s17 + $0x38] sm:$0xff] }
 0x49d   : > { %v1191_v7 = vadd.f32 %v1950_v55, %v1190_v2  ;;  %vm1225_vm10 = vcmp.eq.f32.partialorder %v1224_v32, 8.507059e+37 }
 0x49e   : > { %v1205_v19 = vadd.f32 %v1952_v61, %v1204_v14 }
 0x49f   : > { %v1195_v15 = vsel %vm1194_vm15, %v1950_v55, %v1191_v7 }
 0x4a0   : > { %v1954_v9 = vpop.eup %1953  ;;  %v1200_v18 = vsel %vm1197_vm1, %v1199_v17, %v1195_v15  ;;  %v1209_v25 = vsel %vm1208_vm4, %v1952_v61, %v1205_v19  ;;  %v1651_v17 = vld [vmem:[%s2668_s17 + $0x78] sm:$0xff]  ;;  %v1649_v19 = vld [vmem:[%s2668_s17 + $0x68] sm:$0xff] }
 0x4a1   : > { %v1216_v16 = vmul.f32 %v1954_v9, %v1172_v60  ;;  %v1230_v24 = vmul.f32 %v2438_v40, %v1200_v18  ;;  %v1214_v28 = vsel %vm1211_vm5, %v1213_v27, %v1209_v25  ;;  %vm1221_vm6 = vweird.f32 %v1954_v9  ;;  %1656 = vmatpush.msrb.mxu0 %v1651_v17  ;;  %v1650_v18 = vld [vmem:[%s2668_s17 + $0x70] sm:$0xff]  ;;  %v1645_v27 = vld [vmem:[%s2668_s17 + $0x48] sm:$0xff] }
 0x4a2   : > { %v1231_v33 = vmul.f32 %v2433_v34, %v1214_v28  ;;  %vm1222_vm9 = vmor %vm1220_vm7, %vm1221_vm6  ;;  %v1646_v25 = vld [vmem:[%s2668_s17 + $0x50] sm:$0xff] }
 0x4a3   : > { %v1217_v20 = vsub.f32 1.0, %v1216_v16  ;;  %1657 = vmatpush.msrb.mxu0 %v1650_v18 }
 0x4a5   : > { %v1218_v26 = vmul.f32 %v1954_v9, %v1217_v20  ;;  %1658 = vmatpush.msrb.mxu0 %v1649_v19  ;;  %v1931_v20 = vld [vmem:[%s2669_s2] ss:$0 sm:$0xff] }
 0x4a7   : > { %v1219_v29 = vadd.f32 %v1954_v9, %v1218_v26 }
 0x4a9   : > { %v1223_v35 = vsel %vm1222_vm9, %v1954_v9, %v1219_v29  ;;  %v1644_v29 = vld [vmem:[%s2668_s17 + $0x40] sm:$0xff] }
 0x4aa   : > { %v1228_v37 = vsel %vm1225_vm10, %v1227_v36, %v1223_v35  ;;  %v1642_v35 = vld [vmem:[%s2668_s17 + $0x30] sm:$0xff] }
 0x4ab   : > { %v1232_v39 = vmul.f32 %v2442_v44, %v1228_v37  ;;  %v1499_v44 = vld [vmem:[%s2663_s15 + $0x10] sm:$0xff] }
 0x4fa   : > { %v1028_v8 = vpop.trf.xlu1 }
 0x4fb   : > { %1828 = vmatpush.xpose.msk.msrb.mxu2 %vm1044_vm8, %v1028_v8 }
 0x4fe   : > { %1829 = vmatmul.msk.f32.vlgmr.msrb.gmra.mxu2 %vm1044_vm8, %v1229_v13 }
 0x502   : > { %v1029_v21 = vpop.trf.xlu1 }
 0x503   : > { %1830 = vmatpush.xpose.msk.msra.mxu3 %vm1044_vm8, %v1029_v21  ;;  %v1648_v21 = vld [vmem:[%s2668_s17 + $0x60] sm:$0xff] }
 0x504   : > { %1659 = vmatpush.msrb.mxu0 %v1648_v21 }
 0x506   : > { %1831 = vmatmul.msk.f32.vlgmr.msra.gmra.mxu3 %vm1044_vm8, %v1230_v24  ;;  %1660 = vmatpush.msrb.mxu0 %v1647_v22 }
 0x507   : > { %1584 = vmatpush.msrb.mxu3 %v1564_v62 }
 0x508   : > { %1661 = vmatpush.msrb.mxu0 %v1646_v25 }
 0x50a   : > { %v1030_v30 = vpop.trf.xlu1  ;;  %1662 = vmatpush.msrb.mxu0 %v1645_v27 }
 0x50b   : > { %1832 = vmatpush.xpose.msk.msra.mxu2 %vm1044_vm8, %v1030_v30 }
 0x50c   : > { %1663 = vmatpush.msrb.mxu0 %v1644_v29 }
 0x50e   : > { %1833 = vmatmul.msk.f32.vlgmr.msra.gmra.mxu2 %vm1044_vm8, %v1231_v33  ;;  %1664 = vmatpush.msrb.mxu0 %v1643_v31 }
 0x50f   : > { %1520 = vmatpush.msrb.mxu2 %v1500_v45 }
 0x510   : > { %1665 = vmatpush.msrb.mxu0 %v1642_v35 }
 0x511   : > { %1521 = vmatpush.msrb.mxu2 %v1499_v44 }
 0x512   : > { %v1031_v38 = vpop.trf.xlu1 }
 0x513   : > { %1834 = vmatpush.xpose.msk.msrb.mxu1 %vm1044_vm8, %v1031_v38  ;;  %1522 = vmatpush.msrb.mxu2 %v1498_v46  ;;  %v1641_v38 = vld [vmem:[%s2668_s17 + $0x28] sm:$0xff] }
 0x514   : > { %1666 = vmatpush.msrb.mxu0 %v1641_v38  ;;  %v1637_v46 = vld [vmem:[%s2668_s17 + $0x8] sm:$0xff] }
 0x515   : > { %1523 = vmatpush.msrb.mxu2 %v1497_v47 }
 0x516   : > { %1835 = vmatmul.msk.f32.vlgmr.msrb.gmra.mxu1 %vm1044_vm8, %v1232_v39 }
 0x581   : > { %v1256_v40 = vpop.f32.mrf.mxu2 }
 0x582   : > { %1337 = vxpose.xlu2.b32.start.end [1/1] (short) (narrow) %v1256_v40, 8 }
 0x589   : > { %v1282_v41 = vpop.f32.mrf.mxu3 }
 0x58a   : > { %1369 = vxpose.xlu0.b32.start.end [1/1] (short) (narrow) %v1282_v41, 8  ;;  %v1640_v41 = vld [vmem:[%s2668_s17 + $0x20] sm:$0xff] }
 0x58b   : > { %1667 = vmatpush.msrb.mxu0 %v1640_v41 }
 0x591   : > { %v1308_v42 = vpop.f32.mrf.mxu2 }
 0x592   : > { %1401 = vxpose.xlu2.b32.start.end [1/1] (short) (narrow) %v1308_v42, 8  ;;  %v1639_v42 = vld [vmem:[%s2668_s17 + $0x18] sm:$0xff] }
 0x593   : > { %v1334_v34 = vpop.f32.mrf.mxu1  ;;  %1668 = vmatpush.msrb.mxu0 %v1639_v42 }
 0x594   : > { %1433 = vxpose.xlu0.b32.start.end [1/1] (short) (narrow) %v1334_v34, 8 }
 0x61b   : > { %v1353_v43 = vpop.trf.xlu2 }
 0x61c   : > { %1465 = vxpose.xlu2.b32.start [1/4] (short) (narrow) %v1353_v43, 8  ;;  %v1638_v43 = vld [vmem:[%s2668_s17 + $0x10] sm:$0xff] }
 0x61d   : > { %1669 = vmatpush.msrb.mxu0 %v1638_v43 }
 0x61f   : > { %1670 = vmatpush.msrb.mxu0 %v1637_v46 }
 0x62b   : > { %v1417_v49 = vpop.trf.xlu2 }
 0x62e   : > { %v1385_v48 = vpop.trf.xlu0 }
 0x62f   : > { %1466 = vxpose.xlu2.b32.cont [2/4] (short) (narrow) %v1385_v48, 8  ;;  %v1636_v48 = vld [vmem:[%s2668_s17] sm:$0xff] }
 0x630   : > { %1671 = vmatpush.msrb.mxu0 %v1636_v48 }
 0x637   : > { %1467 = vxpose.xlu2.b32.cont [3/4] (short) (narrow) %v1417_v49, 8 }
 0x638   : > { %v1449_v50 = vpop.trf.xlu0 }
 0x63f   : > { %1468 = vxpose.xlu2.b32.end [4/4] (short) (narrow) %v1449_v50, 8 }
 0x6c0   : > { %v1481_v51 = vpop.trf.xlu2 }
 0x6c1   : > { %1836 = vmatmul.msk.f32.vlgmr.msrb.gmra.mxu2 %vm666_vm0, %v1481_v51 }
 0x744   : > { %v1525_v53 = vpop.f32.mrf.mxu2 }
 0x745   : > { %v1526_v54 = vadd.f32 %v1928_v52, %v1525_v53 }
 0x747   : > { %v2477_v55 = vadd.f32 %v1526_v54, %v2358_v0  ;;  %v1563_v0 = vld [vmem:[%s2665_s1 + $0x10] sm:$0xff] }
 0x748   : > { %1585 = vmatpush.msrb.mxu3 %v1563_v0 }
 0x749   : > { %v1531_v56 = vsel %vm666_vm0, %v2477_v55, 0.0 }
 0x74a   : > { %1532 = vadd.xlane.f32.xlu0 %v1531_v56  ;;  %1586 = vmatpush.msrb.mxu3 %v1562_v63 }
 0x74c   : > { %1587 = vmatpush.msrb.mxu3 %v1561_v1 }
 0x7bd   : > { %v1533_v57 = vpop.xlane.xlu0 %1532 }
 0x7be   : > { %v1534_v58 = vmul.f32 %v1533_v57, %v2363_v10 }
 0x7c0   : > { %v1535_v59 = vsub.f32 %v2477_v55, %v1534_v58 }
 0x7c2   : > { %v1536_v60 = vmul.f32 %v1535_v59, %v1535_v59 }
 0x7c4   : > { %v1537_v61 = vsel %vm666_vm0, %v1536_v60, 0.0 }
 0x7c5   : > { %1538 = vadd.xlane.f32.xlu1 %v1537_v61 }
 0x838   : > { %v1539_v2 = vpop.xlane.xlu1 %1538 }
 0x839   : > { %v1540_v3 = vmul.f32 %v1539_v2, %v2363_v10  ;;  %v1930_v10 = vld [vmem:[%s2667_s13] ss:$0 sm:$0xff]  ;;  %s2670_s13 = sld [smem:[#allocation14_spill]] }
 0x83b   : > { %v1541_v4 = vadd.f32 1e-06, %v1540_v3 }
 0x83d   : > { %1955 = vrsqrt.f32 %v1541_v4  ;;  %vm1548_vm11 = vweird.f32 %v1541_v4 }
 0x83f   : > { %s1840_s14 = sshll.u32 %s2670_s13, 3 }
 0x840   : > { %s1690_s2 = scalar_lea.hbm %s2672_s21, %s1840_s14 }
 0x841   : > { %s1694_s20 = sshll.u32 %s1690_s2, 4  ;;  %s1695_s20 = int_to_ptr.hbm [resolvable:$true] %s1694_s20 }
 0x842   : > { %s2063_s23 = sshra.s32 %s1695_s20, 4  ;;  %s2064_s23 = int_to_ptr.hbm [resolvable:$true] %s2063_s23 }
 0x843   : > { %v1956_v5 = vpop.eup %1955  ;;  %s2065_s9 = scalar_lea.hbm %s2064_s23, 8  ;;  %p2070_p11 = scmp.lt.s32.totalorder %s2064_s23, %s2672_s21 }
 0x844   : > { %v1543_v6 = vmul.f32 %v1956_v5, %v1541_v4  ;;  %vm1549_vm8 = vweird.f32 %v1956_v5  ;;  %p2066_p1 = scmp.ne.s32.totalorder %s2064_s23, %s2065_s9  ;;  %p2071_p12 = scmp.lt.s32.totalorder %s2069_s11, %s2065_s9 }
 0x845   : > { %vm1550_vm12 = vmor %vm1548_vm11, %vm1549_vm8 }
 0x846   : > { %v1544_v7 = vmul.f32 %v1956_v5, %v1543_v6  ;;  %p2067_p4 = pnand %p2066_p1, %p2313_p5  ;;  %p2072_p13 = por %p2071_p12, %p2070_p11 }
 0x848   : > { %v1545_v8 = vmul.f32 0.5, %v1544_v7  ;;  %p2068_p8 = pneg %p2067_p4 }
 0x84a   : > { %v1546_v9 = vsub.f32 1.5, %v1545_v8  ;;  %p2073_p0 = pnand %p2072_p13, %p2068_p8 }
 0x84c   : > { %v1547_v11 = vmul.f32 %v1956_v5, %v1546_v9 }
 0x84e   : > { %v1551_v13 = vsel %vm1550_vm12, %v1956_v5, %v1547_v11 }
 0x84f   : > { %v1552_v14 = vmul.f32 %v1551_v13, %v1535_v59  ;;  %v1932_v13 = vld [vmem:[%s2671_s27] ss:$0 sm:$0xff] }
 0x851   : > { %v1556_v15 = vmul.f32 %v1929_v12, %v1552_v14 }
 0x853   : > { %v1560_v16 = vadd.f32 %v1930_v10, %v1556_v15 }
 0x855   : > { %1837 = vmatmul.msk.f32.vlgmr.msrb.gmra.mxu3 %vm666_vm0, %v1560_v16 }
 0x8d8   : > { %v1589_v23 = vpop.f32.mrf.mxu3 }
 0x8d9   : > { %v2522_v24 = vadd.f32 %v1931_v20, %v1589_v23 }
 0x8db   : > { %v1593_v26 = vmul.f32 0.70710677, %v2522_v24  ;;  %v1592_v9 = vmul.f32 0.5, %v2522_v24 }
 0x8dd   : > { %v1594_v28 = vmul.f32 %v1593_v26, %v1593_v26 }
 0x8df   : > { %v1595_v30 = vmin.f32 %v1594_v28, 16.0 }
 0x8e1   : > { %v1596_v32 = vmul.f32 2.1237322e-06, %v1595_v30  ;;  %v1607_v33 = vmul.f32 3.8918573e-05, %v1595_v30 }
 0x8e3   : > { %v1597_v36 = vadd.f32 0.00028619796, %v1596_v32  ;;  %v1608_v37 = vadd.f32 0.001143296, %v1607_v33 }
 0x8e5   : > { %v1598_v39 = vmul.f32 %v1597_v36, %v1595_v30  ;;  %v1609_v40 = vmul.f32 %v1608_v37, %v1595_v30 }
 0x8e7   : > { %v1610_v34 = vadd.f32 0.014752088, %v1609_v40  ;;  %v1599_v45 = vadd.f32 0.0036580483, %v1598_v39 }
 0x8e9   : > { %v1611_v44 = vmul.f32 %v1610_v34, %v1595_v30  ;;  %v1600_v49 = vmul.f32 %v1599_v45, %v1595_v30 }
 0x8eb   : > { %v1612_v47 = vadd.f32 0.112945676, %v1611_v44  ;;  %v1601_v52 = vadd.f32 0.05243302, %v1600_v49 }
 0x8ed   : > { %v1613_v50 = vmul.f32 %v1612_v47, %v1595_v30  ;;  %v1602_v56 = vmul.f32 %v1601_v52, %v1595_v30 }
 0x8ef   : > { %v1614_v51 = vadd.f32 0.4994258, %v1613_v50  ;;  %v1603_v57 = vadd.f32 0.18741608, %v1602_v56 }
 0x8f1   : > { %v1615_v53 = vmul.f32 %v1614_v51, %v1595_v30  ;;  %v1604_v59 = vmul.f32 %v1603_v57, %v1595_v30 }
 0x8f3   : > { %v1616_v54 = vadd.f32 1.0, %v1615_v53  ;;  %v1605_v0 = vadd.f32 1.1283791, %v1604_v59 }
 0x8f5   : > { %1957 = vrcp.f32 %v1616_v54  ;;  %v1628_v62 = vand.u32 2147483648, %v1616_v54  ;;  %v1626_v1 = vand.u32 2147483647, %v1616_v54  ;;  %vm1622_vm14 = vweird.f32 %v1616_v54 }
 0x8f6   : > { %v1606_v4 = vmul.f32 %v1605_v0, %v1593_v26 }
 0x8f7   : > { %v1629_v3 = vor.u32 1.1754944e-38, %v1628_v62  ;;  %vm1627_vm1 = vcmp.eq.f32.partialorder %v1626_v1, 8.507059e+37 }
 0x8fb   : > { %v1958_v58 = vpop.eup %1957 }
 0x8fc   : > { %v1618_v60 = vmul.f32 %v1958_v58, %v1616_v54  ;;  %vm1623_vm13 = vweird.f32 %v1958_v58 }
 0x8fd   : > { %vm1624_vm15 = vmor %vm1622_vm14, %vm1623_vm13 }
 0x8fe   : > { %v1619_v61 = vsub.f32 1.0, %v1618_v60 }
 0x900   : > { %v1620_v63 = vmul.f32 %v1958_v58, %v1619_v61 }
 0x902   : > { %v1621_v2 = vadd.f32 %v1958_v58, %v1620_v63 }
 0x904   : > { %v1625_v5 = vsel %vm1624_vm15, %v1958_v58, %v1621_v2 }
 0x905   : > { %v1630_v6 = vsel %vm1627_vm1, %v1629_v3, %v1625_v5 }
 0x906   : > { %v1631_v7 = vmul.f32 %v1630_v6, %v1606_v4 }
 0x908   : > { %v1838_v8 = vclamps-f32 %v1631_v7, 1.0 }
 0x90a   : > { %v1634_v11 = vadd.f32 1.0, %v1838_v8 }
 0x90c   : > { %v1635_v12 = vmul.f32 %v1634_v11, %v1592_v9 }
 0x90e   : > { %1672 = vmatmul.f32.vlgmr.msrb.gmra.mxu0 %v1635_v12 }
 0x98b   : > { %v1673_v14 = vpop.f32.mrf.mxu0 }
 0x98c   : > { %v1674_v10 = vadd.f32 %v1932_v13, %v1673_v14 }
 0x98e   : > { %v1676_v15 = vadd.f32 %v1674_v10, %v2477_v55 }
 0x990   : > { %1677 = vst.msk [vmem:[%s662_s26] sm:$0xff] %vm666_vm0, %v1676_v15 }
 0x991   : > { %2076 = shalt.err (!%p2073_p0)
}
 0x992   : > { %1851 = dma.vmem_to_hbm [thread:$0]  (%p2313_p5), %s1693_s24, 128, %s1695_s20, %s1679_s22  }
 0x993 PF: > { %s2674_s3 = sld [smem:[#allocation13_spill]]  ;;  %p1865_p3 = pnand %p1811_p9, %p2283_p6 }
 0x995   : > { %p1866_p7 = pneg %p1865_p3 }
 0x999   : > { %s1706_s18 = sand.u32 1, %s2674_s3  }
 0x99a   : > { %s1707_s27 = scalar_lea.sflag [#allocation4], %s1706_s18 }
 0x99b   : > { %2114 = dma.done.wait (%p1866_p7), %s1707_s27, 128  }
 0x99c   : > { %2116 = vsyncadd (%p1866_p7), %s1707_s27, 4294967168  ;;  %s37_s19 = sadd.s32 1, %s2139_s19   ;;  %s2676_s30 = sld [smem:[#allocation19_spill]] }
 0x99d   : > { %p34_p10 = scmp.ge.s32.totalorder %s37_s19, 4   ;;  %s2677_s0 = sld [smem:[#allocation15_spill]] }
 0x99e   : > { %s2678_s25 = sld [smem:[#allocation17_spill]]  ;;  %s2679_s27 = smov %s2123_s28 }
 0x99f   : > { %s2680_s28 = smov %s2127_s29 }
 0x9a0   :  { %36 = sbr.rel (!%p34_p10) target bundleno = 23 (0x17), region = 154 }
 0x9a2   : > { %s2681_s29 = smov %s2676_s30 }
 0x9a3   : > { %s2682_s30 = smov %s2677_s0 }
 0x9a4   : > { %s2683_s0 = smov %s2678_s25 }
 0x9a5   :  { %1713 = vsyncpa [#allocation3], 1 }
 0x9a6   :  { %1715 = vsyncpa [#allocation3 + $0x1], 1 }
 0x9a7   :  { %1716 = vsyncpa [#allocation6], 1 }
 0x9a8   :  { %1718 = vsyncpa [#allocation6 + $0x1], 1 }
 0x9a9   :  { %1719 = vsyncpa [#allocation4], 1 }
 0x9aa   :  { %1721 = vsyncpa [#allocation4 + $0x1], 1 }

</bundles_post_ra>
